<compile_context>
chip_gen: v6e
topology: v6e:2x2x1
jax: 0.10.0
libtpu: 0.0.40
codegen_flags: <defaults>
</compile_context>

<pallas_src>
import functools

import jax
import jax.numpy as jnp
from jax.experimental import pallas as pl
from jax.experimental.pallas import tpu as pltpu


# ---------------------------------------------------------------------------
# Fused kernel: avgpool(each feat) -> concat -> LayerNorm -> Linear -> ReLU
#               -> Linear(out=1)
# ---------------------------------------------------------------------------
def _fused_counting_kernel(*refs, eps, num_feats, use_mxu):
    feat_refs = refs[:num_feats]
    gamma_ref, beta_ref, w1_ref, b1_ref, w2_ref, b2_ref, o_ref = refs[num_feats:]

    # --- adaptive avg pool to 1x1 for every feature map (stays in VMEM/vregs) ---
    pooled = []
    for f_ref in feat_refs:
        f = f_ref[...].astype(jnp.float32)          # (bb, C_k, HW_k)
        pooled.append(jnp.mean(f, axis=-1))         # (bb, C_k)
    x = pooled[0] if num_feats == 1 else jnp.concatenate(pooled, axis=-1)  # (bb, D)

    # --- LayerNorm (biased variance, eps inside rsqrt: matches nn.LayerNorm) ---
    mean = jnp.mean(x, axis=-1, keepdims=True)
    var = jnp.mean((x - mean) ** 2, axis=-1, keepdims=True)
    xn = (x - mean) * jax.lax.rsqrt(var + eps)
    xn = xn * gamma_ref[...] + beta_ref[...]        # (1, D) broadcasts

    # --- Linear 1 + ReLU ---
    w1 = w1_ref[...]                                # (D, H)
    if use_mxu:
        # production-sized D/H: fill MXU tiles
        h = jnp.dot(xn, w1, preferred_element_type=jnp.float32)
    else:
        # tiny D/H (< 128): MXU tile would be nearly empty -> VPU broadcast-mul
        # + cross-sublane reduce, keeps the MXU/ext slot free.
        h = jnp.sum(xn[:, :, None] * w1[None, :, :], axis=1)
    h = jnp.maximum(h + b1_ref[...], 0.0)           # (bb, H)

    # --- Linear 2 (out_features == 1): row-multiply + lane reduce, no N=1 matmul ---
    y = jnp.sum(h * w2_ref[...], axis=-1, keepdims=True) + b2_ref[...]   # (bb, 1)
    o_ref[...] = y.astype(o_ref.dtype)


# ---------------------------------------------------------------------------
# Wrapper: builds specs / grid and invokes the single fused pallas_call.
# ---------------------------------------------------------------------------
def counting_branch_forward(feats, params, *, eps=1e-5):
    names = list(feats.keys())
    num_feats = len(names)
    B = feats[names[0]].shape[0]
    D = sum(int(feats[n].shape[1]) for n in names)
    H = params["w1"].shape[1]

    # Glue-only reshape (B, C, H, W) -> (B, C, H*W); no compute happens in XLA.
    flat_feats = [feats[n].reshape(B, feats[n].shape[1], -1) for n in names]

    # Batch tiling: 8-row (f32 sublane-aligned) blocks when B divides cleanly,
    # otherwise process the whole (small) batch in one program.
    bb = 8 if (B % 8 == 0 and B > 8) else B
    grid = (B // bb,)

    gamma2 = params["ln_gamma"].reshape(1, D)
    beta2 = params["ln_beta"].reshape(1, D)
    w1 = params["w1"]                       # (D, H)
    b1_2 = params["b1"].reshape(1, H)
    w2_row = params["w2"].reshape(1, H)     # (H, 1) stored as a lane-dense row
    b2_2 = params["b2"].reshape(1, 1)

    in_specs = []
    for f in flat_feats:
        c, hw = int(f.shape[1]), int(f.shape[2])
        in_specs.append(pl.BlockSpec((bb, c, hw), lambda i: (i, 0, 0)))
    # Weights/params: constant index_maps -> VMEM-resident across all grid steps.
    in_specs += [
        pl.BlockSpec((1, D), lambda i: (0, 0)),   # gamma
        pl.BlockSpec((1, D), lambda i: (0, 0)),   # beta
        pl.BlockSpec((D, H), lambda i: (0, 0)),   # w1
        pl.BlockSpec((1, H), lambda i: (0, 0)),   # b1
        pl.BlockSpec((1, H), lambda i: (0, 0)),   # w2 (as a row)
        pl.BlockSpec((1, 1), lambda i: (0, 0)),   # b2
    ]
    out_spec = pl.BlockSpec((bb, 1), lambda i: (i, 0))

    use_mxu = (D >= 128) and (H >= 128)
    kernel = functools.partial(
        _fused_counting_kernel, eps=eps, num_feats=num_feats, use_mxu=use_mxu)

    # VMEM budget: double-buffered activation tiles + resident params + output,
    # with headroom; capped well below v7x's 64 MiB physical VMEM.
    feat_block_bytes = sum(bb * int(f.shape[1]) * int(f.shape[2]) * 4 for f in flat_feats)
    param_bytes = (2 * D + D * H + 2 * H + 1) * 4
    needed = 2 * feat_block_bytes + param_bytes + 2 * bb * 4
    vmem_limit = int(min(max(4 * needed, 8 * 1024 * 1024), 32 * 1024 * 1024))

    total_feat_elems = sum(B * int(f.shape[1]) * int(f.shape[2]) for f in flat_feats)
    flops = (2 * total_feat_elems            # pooling reductions
             + 10 * B * D                    # layernorm
             + 2 * B * D * H + 2 * B * H)    # mlp
    bytes_accessed = 4 * (total_feat_elems + 2 * D + D * H + 2 * H + 1 + B)

    return pl.pallas_call(
        kernel,
        out_shape=jax.ShapeDtypeStruct((B, 1), jnp.float32),
        grid=grid,
        in_specs=in_specs,
        out_specs=out_spec,
        compiler_params=pltpu.CompilerParams(
            dimension_semantics=("parallel",),      # shards batch tiles on v7x megacore
            vmem_limit_bytes=vmem_limit,
        ),
        cost_estimate=pl.CostEstimate(
            flops=flops, transcendentals=B, bytes_accessed=bytes_accessed),
    )(*flat_feats, gamma2, beta2, w1, b1_2, w2_row, b2_2)


# ---------------------------------------------------------------------------
# Params + pure-JAX reference (PyTorch semantics) for checking.
# ---------------------------------------------------------------------------
def init_params(key, input_dim, hidden_dim):
    k1, k2, k3, k4 = jax.random.split(key, 4)
    # Weights stored as (in, out), i.e. torch weight.T
    return {
        "ln_gamma": jnp.ones((input_dim,), jnp.float32),
        "ln_beta": jnp.zeros((input_dim,), jnp.float32),
        "w1": 0.1 * jax.random.normal(k1, (input_dim, hidden_dim), jnp.float32),
        "b1": 0.1 * jax.random.normal(k2, (hidden_dim,), jnp.float32),
        "w2": 0.1 * jax.random.normal(k3, (hidden_dim, 1), jnp.float32),
        "b2": 0.1 * jax.random.normal(k4, (1,), jnp.float32),
    }


def reference_forward(feats, params, eps=1e-5):
    pooled = [jnp.mean(feats[k], axis=(2, 3)) for k in feats]
    x = jnp.concatenate(pooled, axis=1)
    mean = jnp.mean(x, axis=-1, keepdims=True)
    var = jnp.mean((x - mean) ** 2, axis=-1, keepdims=True)
    xn = (x - mean) / jnp.sqrt(var + eps)
    xn = xn * params["ln_gamma"] + params["ln_beta"]
    h = jnp.maximum(xn @ params["w1"] + params["b1"], 0.0)
    return h @ params["w2"] + params["b2"]


if __name__ == "__main__":
    key = jax.random.PRNGKey(0)
    k_feat, k_params = jax.random.split(key)

    # feat_dims like the torch module's constructor argument
    feat_dims = {"p3": 4, "p4": 8, "p5": 4}           # input_dim = 16
    spatial = {"p3": 16, "p4": 8, "p5": 4}
    hidden_dim = 32
    B = 2

    feat_keys = jax.random.split(k_feat, len(feat_dims))
    feats = {}
    for (name, c), kk in zip(feat_dims.items(), feat_keys):
        s = spatial[name]
        feats[name] = jax.random.normal(kk, (B, c, s, s), jnp.float32)

    params = init_params(k_params, sum(feat_dims.values()), hidden_dim)

    # Small-batch path (grid = (1,), whole batch in one program)
    out = jax.block_until_ready(counting_branch_forward(feats, params))
    ref = reference_forward(feats, params)
    assert out.shape == (B, 1)
    assert jnp.allclose(out, ref, atol=1e-4, rtol=1e-4)

    # Batch-tiled path (grid = (2,), bb = 8, parallel axis, resident weights)
    B2 = 16
    feats2 = {k: jnp.tile(v, (B2 // B, 1, 1, 1)) for k, v in feats.items()}
    out2 = jax.block_until_ready(counting_branch_forward(feats2, params))
    ref2 = reference_forward(feats2, params)
    assert out2.shape == (B2, 1)
    assert jnp.allclose(out2, ref2, atol=1e-4, rtol=1e-4)

    print("KERNEL_OK")
</pallas_src>

<mosaic_0001>
module attributes {stable_mosaic.version = 11 : i64} {
  func.func @_fused_counting_kernel(%arg0: i32, %arg1: memref<2x4x256xf32, #tpu.memory_space<vmem>>, %arg2: memref<2x8x64xf32, #tpu.memory_space<vmem>>, %arg3: memref<2x4x16xf32, #tpu.memory_space<vmem>>, %arg4: memref<1x16xf32, #tpu.memory_space<vmem>>, %arg5: memref<1x16xf32, #tpu.memory_space<vmem>>, %arg6: memref<16x32xf32, #tpu.memory_space<vmem>>, %arg7: memref<1x32xf32, #tpu.memory_space<vmem>>, %arg8: memref<1x32xf32, #tpu.memory_space<vmem>>, %arg9: memref<1x1xf32, #tpu.memory_space<vmem>>, %arg10: memref<2x1xf32, #tpu.memory_space<vmem>>) attributes {dimension_semantics = [#tpu.dimension_semantics<parallel>], iteration_bounds = array<i64: 1>, scalar_prefetch = 0 : i64, scratch_operands = 0 : i64, tpu.core_type = #tpu.core_type<tc>, window_params = [{transform_indices = @transform_0, window_bounds = array<i64: 2, 4, 256>}, {transform_indices = @transform_1, window_bounds = array<i64: 2, 8, 64>}, {transform_indices = @transform_2, window_bounds = array<i64: 2, 4, 16>}, {pipeline_mode = #tpu.pipeline_mode<synchronous>, transform_indices = @transform_3, window_bounds = array<i64: 1, 16>}, {pipeline_mode = #tpu.pipeline_mode<synchronous>, transform_indices = @transform_4, window_bounds = array<i64: 1, 16>}, {pipeline_mode = #tpu.pipeline_mode<synchronous>, transform_indices = @transform_5, window_bounds = array<i64: 16, 32>}, {pipeline_mode = #tpu.pipeline_mode<synchronous>, transform_indices = @transform_6, window_bounds = array<i64: 1, 32>}, {pipeline_mode = #tpu.pipeline_mode<synchronous>, transform_indices = @transform_7, window_bounds = array<i64: 1, 32>}, {pipeline_mode = #tpu.pipeline_mode<synchronous>, transform_indices = @transform_8, window_bounds = array<i64: 1, 1>}, {transform_indices = @transform_9, window_bounds = array<i64: 2, 1>}]} {
    %c0 = arith.constant 0 : index
    %c0_0 = arith.constant 0 : index
    %c0_1 = arith.constant 0 : index
    %0 = vector.load %arg1[%c0, %c0_0, %c0_1] : memref<2x4x256xf32, #tpu.memory_space<vmem>>, vector<2x4x256xf32>
    %cst = arith.constant dense<0.000000e+00> : vector<2x4xf32>
    %1 = vector.multi_reduction <add>, %0, %cst [2] : vector<2x4x256xf32> to vector<2x4xf32>
    %cst_2 = arith.constant 2.560000e+02 : f32
    %2 = vector.broadcast %cst_2 : f32 to vector<2x4xf32>
    %3 = arith.divf %1, %2 : vector<2x4xf32>
    %c0_3 = arith.constant 0 : index
    %c0_4 = arith.constant 0 : index
    %c0_5 = arith.constant 0 : index
    %4 = vector.load %arg2[%c0_3, %c0_4, %c0_5] : memref<2x8x64xf32, #tpu.memory_space<vmem>>, vector<2x8x64xf32>
    %cst_6 = arith.constant dense<0.000000e+00> : vector<2x8xf32>
    %5 = vector.multi_reduction <add>, %4, %cst_6 [2] : vector<2x8x64xf32> to vector<2x8xf32>
    %cst_7 = arith.constant 6.400000e+01 : f32
    %6 = vector.broadcast %cst_7 : f32 to vector<2x8xf32>
    %7 = arith.divf %5, %6 : vector<2x8xf32>
    %c0_8 = arith.constant 0 : index
    %c0_9 = arith.constant 0 : index
    %c0_10 = arith.constant 0 : index
    %8 = vector.load %arg3[%c0_8, %c0_9, %c0_10] : memref<2x4x16xf32, #tpu.memory_space<vmem>>, vector<2x4x16xf32>
    %cst_11 = arith.constant dense<0.000000e+00> : vector<2x4xf32>
    %9 = vector.multi_reduction <add>, %8, %cst_11 [2] : vector<2x4x16xf32> to vector<2x4xf32>
    %cst_12 = arith.constant 1.600000e+01 : f32
    %10 = vector.broadcast %cst_12 : f32 to vector<2x4xf32>
    %11 = arith.divf %9, %10 : vector<2x4xf32>
    %12 = tpu.concatenate %3, %7, %11 in 1 : vector<2x4xf32>, vector<2x8xf32>, vector<2x4xf32> -> vector<2x16xf32>
    %cst_13 = arith.constant dense<0.000000e+00> : vector<2xf32>
    %13 = vector.multi_reduction <add>, %12, %cst_13 [1] : vector<2x16xf32> to vector<2xf32>
    %14 = vector.shape_cast %13 : vector<2xf32> to vector<2x1xf32>
    %cst_14 = arith.constant 1.600000e+01 : f32
    %15 = vector.broadcast %cst_14 : f32 to vector<2x1xf32>
    %16 = arith.divf %14, %15 : vector<2x1xf32>
    %17 = vector.broadcast %16 : vector<2x1xf32> to vector<2x16xf32>
    %18 = arith.subf %12, %17 : vector<2x16xf32>
    %19 = arith.mulf %18, %18 : vector<2x16xf32>
    %cst_15 = arith.constant dense<0.000000e+00> : vector<2xf32>
    %20 = vector.multi_reduction <add>, %19, %cst_15 [1] : vector<2x16xf32> to vector<2xf32>
    %21 = vector.shape_cast %20 : vector<2xf32> to vector<2x1xf32>
    %cst_16 = arith.constant 1.600000e+01 : f32
    %22 = vector.broadcast %cst_16 : f32 to vector<2x1xf32>
    %23 = arith.divf %21, %22 : vector<2x1xf32>
    %24 = vector.broadcast %16 : vector<2x1xf32> to vector<2x16xf32>
    %25 = arith.subf %12, %24 : vector<2x16xf32>
    %cst_17 = arith.constant 9.99999974E-6 : f32
    %26 = vector.broadcast %cst_17 : f32 to vector<2x1xf32>
    %27 = arith.addf %23, %26 : vector<2x1xf32>
    %28 = math.rsqrt %27 : vector<2x1xf32>
    %29 = vector.broadcast %28 : vector<2x1xf32> to vector<2x16xf32>
    %30 = arith.mulf %25, %29 : vector<2x16xf32>
    %c0_18 = arith.constant 0 : index
    %c0_19 = arith.constant 0 : index
    %31 = vector.load %arg4[%c0_18, %c0_19] : memref<1x16xf32, #tpu.memory_space<vmem>>, vector<1x16xf32>
    %32 = vector.broadcast %31 : vector<1x16xf32> to vector<2x16xf32>
    %33 = arith.mulf %30, %32 : vector<2x16xf32>
    %c0_20 = arith.constant 0 : index
    %c0_21 = arith.constant 0 : index
    %34 = vector.load %arg5[%c0_20, %c0_21] : memref<1x16xf32, #tpu.memory_space<vmem>>, vector<1x16xf32>
    %35 = vector.broadcast %34 : vector<1x16xf32> to vector<2x16xf32>
    %36 = arith.addf %33, %35 : vector<2x16xf32>
    %c0_22 = arith.constant 0 : index
    %c0_23 = arith.constant 0 : index
    %37 = vector.load %arg6[%c0_22, %c0_23] : memref<16x32xf32, #tpu.memory_space<vmem>>, vector<16x32xf32>
    %38 = vector.shape_cast %36 : vector<2x16xf32> to vector<2x16x1xf32>
    %39 = vector.shape_cast %37 : vector<16x32xf32> to vector<1x16x32xf32>
    %40 = vector.broadcast %38 : vector<2x16x1xf32> to vector<2x16x32xf32>
    %41 = vector.broadcast %39 : vector<1x16x32xf32> to vector<2x16x32xf32>
    %42 = arith.mulf %40, %41 : vector<2x16x32xf32>
    %cst_24 = arith.constant dense<0.000000e+00> : vector<2x32xf32>
    %43 = vector.multi_reduction <add>, %42, %cst_24 [1] : vector<2x16x32xf32> to vector<2x32xf32>
    %c0_25 = arith.constant 0 : index
    %c0_26 = arith.constant 0 : index
    %44 = vector.load %arg7[%c0_25, %c0_26] : memref<1x32xf32, #tpu.memory_space<vmem>>, vector<1x32xf32>
    %45 = vector.broadcast %44 : vector<1x32xf32> to vector<2x32xf32>
    %46 = arith.addf %43, %45 : vector<2x32xf32>
    %cst_27 = arith.constant 0.000000e+00 : f32
    %47 = vector.broadcast %cst_27 : f32 to vector<2x32xf32>
    %48 = arith.maximumf %46, %47 : vector<2x32xf32>
    %c0_28 = arith.constant 0 : index
    %c0_29 = arith.constant 0 : index
    %49 = vector.load %arg8[%c0_28, %c0_29] : memref<1x32xf32, #tpu.memory_space<vmem>>, vector<1x32xf32>
    %50 = vector.broadcast %49 : vector<1x32xf32> to vector<2x32xf32>
    %51 = arith.mulf %48, %50 : vector<2x32xf32>
    %cst_30 = arith.constant dense<0.000000e+00> : vector<2xf32>
    %52 = vector.multi_reduction <add>, %51, %cst_30 [1] : vector<2x32xf32> to vector<2xf32>
    %53 = vector.shape_cast %52 : vector<2xf32> to vector<2x1xf32>
    %c0_31 = arith.constant 0 : index
    %c0_32 = arith.constant 0 : index
    %54 = vector.load %arg9[%c0_31, %c0_32] : memref<1x1xf32, #tpu.memory_space<vmem>>, vector<1x1xf32>
    %55 = vector.broadcast %54 : vector<1x1xf32> to vector<2x1xf32>
    %56 = arith.addf %53, %55 : vector<2x1xf32>
    %c0_33 = arith.constant 0 : index
    %c0_34 = arith.constant 0 : index
    %57 = vector.load %arg10[%c0_33, %c0_34] : memref<2x1xf32, #tpu.memory_space<vmem>>, vector<2x1xf32>
    tpu.vector_store %arg10[%c0_33, %c0_34], %56 {strides = array<i32>} : memref<2x1xf32, #tpu.memory_space<vmem>>, vector<2x1xf32>,
    return
  }
  func.func @transform_0(%arg0: i32) -> (i32, i32, i32) {
    %c0_i32 = arith.constant 0 : i32
    %c0_i32_0 = arith.constant 0 : i32
    %c0_i32_1 = arith.constant 0 : i32
    return %arg0, %c0_i32, %c0_i32_0 : i32, i32, i32
  }
  func.func @transform_1(%arg0: i32) -> (i32, i32, i32) {
    %c0_i32 = arith.constant 0 : i32
    %c0_i32_0 = arith.constant 0 : i32
    %c0_i32_1 = arith.constant 0 : i32
    return %arg0, %c0_i32, %c0_i32_0 : i32, i32, i32
  }
  func.func @transform_2(%arg0: i32) -> (i32, i32, i32) {
    %c0_i32 = arith.constant 0 : i32
    %c0_i32_0 = arith.constant 0 : i32
    %c0_i32_1 = arith.constant 0 : i32
    return %arg0, %c0_i32, %c0_i32_0 : i32, i32, i32
  }
  func.func @transform_3(%arg0: i32) -> (i32, i32) {
    %c0_i32 = arith.constant 0 : i32
    %c0_i32_0 = arith.constant 0 : i32
    %c0_i32_1 = arith.constant 0 : i32
    return %c0_i32, %c0_i32_0 : i32, i32
  }
  func.func @transform_4(%arg0: i32) -> (i32, i32) {
    %c0_i32 = arith.constant 0 : i32
    %c0_i32_0 = arith.constant 0 : i32
    %c0_i32_1 = arith.constant 0 : i32
    return %c0_i32, %c0_i32_0 : i32, i32
  }
  func.func @transform_5(%arg0: i32) -> (i32, i32) {
    %c0_i32 = arith.constant 0 : i32
    %c0_i32_0 = arith.constant 0 : i32
    %c0_i32_1 = arith.constant 0 : i32
    return %c0_i32, %c0_i32_0 : i32, i32
  }
  func.func @transform_6(%arg0: i32) -> (i32, i32) {
    %c0_i32 = arith.constant 0 : i32
    %c0_i32_0 = arith.constant 0 : i32
    %c0_i32_1 = arith.constant 0 : i32
    return %c0_i32, %c0_i32_0 : i32, i32
  }
  func.func @transform_7(%arg0: i32) -> (i32, i32) {
    %c0_i32 = arith.constant 0 : i32
    %c0_i32_0 = arith.constant 0 : i32
    %c0_i32_1 = arith.constant 0 : i32
    return %c0_i32, %c0_i32_0 : i32, i32
  }
  func.func @transform_8(%arg0: i32) -> (i32, i32) {
    %c0_i32 = arith.constant 0 : i32
    %c0_i32_0 = arith.constant 0 : i32
    %c0_i32_1 = arith.constant 0 : i32
    return %c0_i32, %c0_i32_0 : i32, i32
  }
  func.func @transform_9(%arg0: i32) -> (i32, i32) {
    %c0_i32 = arith.constant 0 : i32
    %c0_i32_0 = arith.constant 0 : i32
    return %arg0, %c0_i32 : i32, i32
  }
}

</mosaic_0001>

<bundles_post_ra>
// kernel: tpu_custom_call.1
= control target key start
LH: loop header
LB: loop body
LE: loop exit
PB: predicated region body
PF: predicated region fallthrough
CT: control target
= control target key end

     0   :  { %s511_s0 = inlined_call_operand.hbm [shape: f32[2,4,256], index: 0, kind: input, shape index: {}]   ;;  %s512_s1 = inlined_call_operand.hbm [shape: f32[2,8,64], index: 1, kind: input, shape index: {}]   ;;  %s513_s2 = inlined_call_operand.hbm [shape: f32[2,4,16], index: 2, kind: input, shape index: {}]   ;;  %s514_s3 = inlined_call_operand.vmem [shape: f32[1,16], index: 3, kind: input, shape index: {}]   ;;  %s515_s4 = inlined_call_operand.vmem [shape: f32[1,16], index: 4, kind: input, shape index: {}]   ;;  %s516_s5 = inlined_call_operand.hbm [shape: f32[16,32], index: 5, kind: input, shape index: {}]   ;;  %s517_s6 = inlined_call_operand.vmem [shape: f32[1,32], index: 6, kind: input, shape index: {}]   ;;  %s518_s7 = inlined_call_operand.vmem [shape: f32[1,32], index: 7, kind: input, shape index: {}]   ;;  %s519_s8 = inlined_call_operand.<no memory space> [shape: f32[1,1], index: 8, kind: input, shape index: {}]   ;;  %s520_s9 = inlined_call_operand.vmem [shape: f32[2,1], index: 9, kind: output, shape index: {}]  }
   0x1   :  { %v14_v0 = vstv %s519_s8 }
   0x2   :  { %15 = vst [vmem:[#allocation2] sm:$0x1] %v14_v0 }
   0x3   :  { %16 = vsyncpa [#allocation4], 0 }
   0x4   :  { %17 = vsyncpa [#allocation6], 0 }
   0x5   :  { %18 = vsyncpa [#allocation9], 0  ;;  %s406_s11 = smov [#allocation5]   ;;  %s407_s13 = smov [#allocation3]  }
   0x6   :  { %s36_s12 = sshll.u32 %s406_s11, 4  ;;  %s24_s14 = sshll.u32 %s407_s13, 4  ;;  %s37_s12 = int_to_ptr.vmem [resolvable:$true] %s36_s12  ;;  %s25_s14 = int_to_ptr.vmem [resolvable:$true] %s24_s14 }
   0x7   :  { %s328_s15 = scalar_lea.vmem %s37_s12, 256  ;;  %p333_p1 = scmp.lt.s32.totalorder %s37_s12, %s37_s12 }
   0x8   :  { %p329_p0 = scmp.ne.s32.totalorder %s37_s12, %s328_s15  ;;  %p334_p2 = scmp.lt.s32.totalorder %s328_s15, %s328_s15 }
   0xa   :  { %p335_p3 = por %p334_p2, %p333_p1 }
   0xc   :  { %p336_p4 = pnand %p335_p3, %p329_p0 }
   0xe   :  { %339 = shalt.err (!%p336_p4)
}
   0xf   :  { %s408_s16 = smov 128   ;;  %s409_s17 = smov 8  }
  0x10   :  { %42 = dma.hbm_to_vmem [thread:$0]  %s512_s1, 256, %s37_s12, [#allocation6], %s408_s16, %s408_s16, %s409_s17  }
  0x11   :  { %s348_s19 = scalar_lea.vmem %s25_s14, 256  ;;  %p353_p6 = scmp.lt.s32.totalorder %s25_s14, %s25_s14 }
  0x12   :  { %p349_p5 = scmp.ne.s32.totalorder %s25_s14, %s348_s19  ;;  %p354_p7 = scmp.lt.s32.totalorder %s348_s19, %s348_s19 }
  0x14   :  { %p355_p8 = por %p354_p7, %p353_p6 }
  0x16   :  { %p356_p9 = pnand %p355_p8, %p349_p5 }
  0x18   :  { %359 = shalt.err (!%p356_p9)
}
  0x19   :  { %30 = dma.hbm_to_vmem [thread:$0]  %s511_s0, 256, %s25_s14, [#allocation4], %s408_s16, %s408_s16, %s409_s17  }
  0x1a   :  { %s410_s22 = smov [#allocation7]  }
  0x1b   :  { %s48_s23 = sshll.u32 %s410_s22, 4  ;;  %s49_s23 = int_to_ptr.vmem [resolvable:$true] %s48_s23 }
  0x1c   :  { %s368_s24 = scalar_lea.vmem %s49_s23, 128  ;;  %p373_p11 = scmp.lt.s32.totalorder %s49_s23, %s49_s23 }
  0x1d   :  { %p369_p10 = scmp.ne.s32.totalorder %s49_s23, %s368_s24  ;;  %p374_p12 = scmp.lt.s32.totalorder %s368_s24, %s368_s24 }
  0x1f   :  { %p375_p13 = por %p374_p12, %p373_p11 }
  0x21   :  { %p376_p0 = pnand %p375_p13, %p369_p10 }
  0x23   :  { %379 = shalt.err (!%p376_p0)
}
  0x24   :  { %s411_s1 = smov 64   ;;  %s412_s25 = smov 4  }
  0x25   :  { %54 = dma.hbm_to_vmem [thread:$0]  %s513_s2, 128, %s49_s23, [#allocation6], %s411_s1, %s411_s1, %s412_s25  }
  0x26   :  { %s413_s28 = smov [#allocation8]  }
  0x27   :  { %s64_s29 = sshll.u32 %s413_s28, 4  ;;  %s65_s29 = int_to_ptr.vmem [resolvable:$true] %s64_s29 }
  0x28   :  { %s388_s0 = scalar_lea.vmem %s65_s29, 256  ;;  %p393_p2 = scmp.lt.s32.totalorder %s65_s29, %s65_s29 }
  0x29   :  { %p389_p1 = scmp.ne.s32.totalorder %s65_s29, %s388_s0  ;;  %p394_p3 = scmp.lt.s32.totalorder %s388_s0, %s388_s0 }
  0x2b   :  { %p395_p4 = por %p394_p3, %p393_p2 }
  0x2d   :  { %p396_p5 = pnand %p395_p4, %p389_p1 }
  0x2f   :  { %399 = shalt.err (!%p396_p5)
}
  0x30   :  { %70 = dma.hbm_to_vmem [thread:$0]  %s516_s5, 256, %s65_s29, [#allocation9], %s408_s16, %s408_s16, %s409_s17  }
  0x31   :  { %400 = dma.done.wait [#allocation4], 256  }
  0x32   :  { %401 = vsyncadd [#allocation4], 4294967040 }
  0x33   :  { %402 = dma.done.wait [#allocation6], 384  }
  0x34   :  { %403 = vsyncadd [#allocation6], 4294966912 }
  0x35   :  { %404 = dma.done.wait [#allocation9], 256  }
  0x36   :  { %405 = vsyncadd [#allocation9], 4294967040  ;;  %vm113_vm0 = vcmask 523264   ;;  %vm97_vm1 = vcmask 1043456   ;;  %v111_v1 = vld [vmem:[#allocation5] sm:$0xff]  ;;  %v112_v2 = vld [vmem:[#allocation5 + $0x8] sm:$0xff]  ;;  %v137_v19 = vlaneseq }
  0x37   :  { %v89_v3 = vld [vmem:[#allocation3] sm:$0xff]  ;;  %v114_v4 = vsel %vm113_vm0, %v111_v1, 0.0  ;;  %v90_v7 = vld [vmem:[#allocation3 + $0x8] sm:$0xff]  ;;  %v117_v9 = vsel %vm113_vm0, %v112_v2, 0.0  ;;  %vm125_vm2 = vcmask 125952   ;;  %vm147_vm3 = vcmask 1041409  }
  0x38   :  { %v93_v5 = vcombine.high %v89_v3, %v89_v3  ;;  %v98_v6 = vsel %vm97_vm1, %v89_v3, 0.0  ;;  %115 = vadd.xlane.f32.xlu1 %v114_v4  ;;  %v94_v8 = vcombine.high %v90_v7, %v90_v7  ;;  %v103_v11 = vsel %vm97_vm1, %v90_v7, 0.0  ;;  %v124_v14 = vld [vmem:[#allocation7 + $0x4] sm:$0xf]  ;;  %v123_v17 = vld [vmem:[#allocation7] sm:$0xf] }
  0x39   :  { %v129_v16 = vsel %vm125_vm2, %v124_v14, 0.0  ;;  %v126_v18 = vsel %vm125_vm2, %v123_v17, 0.0  ;;  %v138_v20 = vand.u32 127, %v137_v19  ;;  %v140_v22 = vshrl.u32 %v137_v19, 7  ;;  %v303_v60 = vld [vmem:[%s514_s3] ss:$0 sm:$0xff] }
  0x3a   :  { %v99_v10 = vsel %vm97_vm1, %v93_v5, 0.0  ;;  %v104_v13 = vsel %vm97_vm1, %v94_v8, 0.0  ;;  %vm176_vm4 = vcmask 31744   ;;  %vm178_vm5 = vcmask 97280   ;;  %v304_v62 = vld [vmem:[%s515_s4] ss:$0 sm:$0xff] }
  0x3b   :  { %v100_v12 = vadd.f32 %v99_v10, %v98_v6  ;;  %v105_v15 = vadd.f32 %v104_v13, %v103_v11  ;;  %v152_v23 = vadd.s32 4294967292, %v138_v20  ;;  %v165_v26 = vadd.s32 4294967284, %v138_v20  ;;  %v211_v5 = vld [vmem:[#allocation8 + $0x8] sm:$0xff]  ;;  %v210_v6 = vld [vmem:[#allocation8] sm:$0xff] }
  0x3c   :  { %118 = vadd.xlane.f32.xlu1 %v117_v9  ;;  %v141_v30 = vsub.s32 %v138_v20, %v140_v22  ;;  %vm180_vm6 = vcmask 123904   ;;  %v225_v0 = vsub.s32 1, %v140_v22  ;;  %v214_v3 = vsub.s32 0, %v140_v22 }
  0x3d   :  { %101 = vadd.xlane.f32.xlu0 %v100_v12  ;;  %v155_v27 = vsub.s32 %v152_v23, %v140_v22  ;;  %v168_v35 = vsub.s32 %v165_v26, %v140_v22  ;;  %vm238_vm7 = vcmask 261120   ;;  %vm282_vm8 = vcmask 254976  }
  0x3e   :  { %vm294_vm9 = vcmask 1024  }
  0x40   :  { %130 = vadd.xlane.f32.xlu1 %v129_v16 }
  0x41   :  { %106 = vadd.xlane.f32.xlu0 %v105_v15 }
  0x45   :  { %127 = vadd.xlane.f32.xlu0 %v126_v18 }
  0xc1   :  { %v116_v21 = vpop.xlane.xlu1 %115 }
  0xc2   :  { %v121_v28 = vmul.f32 0.015625, %v116_v21 }
  0xc4   :  { %v156_v38 = vrot.slane %v121_v28, %v155_v27 }
  0xc5   :  { %v119_v24 = vpop.xlane.xlu1 %118 }
  0xc6   :  { %v102_v25 = vpop.xlane.xlu0 %101  ;;  %v122_v29 = vmul.f32 0.015625, %v119_v24 }
  0xc7   :  { %v109_v31 = vmul.f32 0.00390625, %v102_v25 }
  0xc8   :  { %v160_v39 = vrot.slane %v122_v29, %v155_v27  ;;  %v305_v27 = vld [vmem:[%s517_s6] ss:$0 sm:$0xff] }
  0xc9   :  { %v131_v33 = vpop.xlane.xlu1 %130  ;;  %v142_v40 = vrot.slane %v109_v31, %v141_v30 }
  0xca   :  { %v107_v32 = vpop.xlane.xlu0 %106  ;;  %v134_v36 = vmul.f32 0.0625, %v131_v33  ;;  %v161_v46 = vsel %vm147_vm3, %v160_v39, %v156_v38 }
  0xcb   :  { %v110_v34 = vmul.f32 0.00390625, %v107_v32 }
  0xcc   :  { %v173_v42 = vrot.slane %v134_v36, %v168_v35 }
  0xcd   :  { %v146_v37 = vrot.slane %v110_v34, %v141_v30 }
  0xce   :  { %v128_v41 = vpop.xlane.xlu0 %127 }
  0xcf   :  { %v133_v43 = vmul.f32 0.0625, %v128_v41  ;;  %v148_v44 = vsel %vm147_vm3, %v146_v37, %v142_v40 }
  0xd0   :  { %v177_v48 = vsel %vm176_vm4, %v148_v44, %v161_v46  ;;  %v307_v44 = vld [vmem:[#allocation2] ss:$0 sm:$0xff] }
  0xd1   :  { %v169_v45 = vrot.slane %v133_v43, %v168_v35  ;;  %v306_v35 = vld [vmem:[%s518_s7] ss:$0 sm:$0xff] }
  0xd3   :  { %v174_v47 = vsel %vm147_vm3, %v173_v42, %v169_v45 }
  0xd4   :  { %v179_v49 = vsel %vm178_vm5, %v177_v48, %v174_v47 }
  0xd5   :  { %v181_v50 = vsel %vm180_vm6, %v179_v49, 0.0 }
  0xd6   :  { %182 = vadd.xlane.f32.xlu0 %v181_v50 }
 0x15f   :  { %v183_v51 = vpop.xlane.xlu0 %182 }
 0x160   :  { %v184_v52 = vmul.f32 0.0625, %v183_v51 }
 0x162   :  { %v185_v53 = vsub.f32 %v179_v49, %v184_v52 }
 0x164   :  { %v186_v54 = vmul.f32 %v185_v53, %v185_v53 }
 0x166   :  { %v187_v55 = vsel %vm180_vm6, %v186_v54, 0.0 }
 0x167   :  { %188 = vadd.xlane.f32.xlu1 %v187_v55 }
 0x1f0   :  { %v189_v56 = vpop.xlane.xlu1 %188 }
 0x1f1   :  { %v190_v57 = vmul.f32 0.0625, %v189_v56 }
 0x1f3   :  { %v191_v58 = vadd.f32 1e-05, %v190_v57 }
 0x1f5   :  { %318 = vrsqrt.f32 %v191_v58 }
 0x202   :  { %v319_v59 = vpop.eup %318 }
 0x203   :  { %v193_v61 = vmul.f32 %v319_v59, %v185_v53 }
 0x205   :  { %v201_v63 = vmul.f32 %v303_v60, %v193_v61 }
 0x207   :  { %v209_v1 = vadd.f32 %v304_v62, %v201_v63 }
 0x209   :  { %v226_v2 = vrot.slane %v209_v1, %v225_v0  ;;  %v215_v4 = vrot.slane %v209_v1, %v214_v3 }
 0x20b   :  { %232 = vbcast.lane.b32.xlu1 %v226_v2, 264  ;;  %228 = vbcast.lane.b32.xlu0 %v226_v2, 256 }
 0x20f   :  { %217 = vbcast.lane.b32.xlu1 %v215_v4, 256 }
 0x213   :  { %221 = vbcast.lane.b32.xlu1 %v215_v4, 264 }
 0x27d   :  { %v233_v7 = vpop.permute.xlu1 %232  ;;  %v229_v8 = vpop.permute.xlu0 %228 }
 0x27e   :  { %v237_v9 = vmul.f32 %v233_v7, %v211_v5  ;;  %v236_v10 = vmul.f32 %v229_v8, %v210_v6 }
 0x280   :  { %v249_v11 = vsel %vm238_vm7, %v237_v9, 0.0  ;;  %v248_v12 = vsel %vm238_vm7, %v236_v10, 0.0 }
 0x281   :  { %v250_v13 = vadd.f32 %v249_v11, %v248_v12  ;;  %v218_v14 = vpop.permute.xlu1 %217 }
 0x282   :  { %v234_v16 = vmul.f32 %v218_v14, %v210_v6 }
 0x283   :  { %v251_v15 = vrot.slane %v250_v13, 4 }
 0x284   :  { %v239_v21 = vsel %vm238_vm7, %v234_v16, 0.0 }
 0x285   :  { %v252_v17 = vadd.f32 %v251_v15, %v250_v13  ;;  %v222_v18 = vpop.permute.xlu1 %221 }
 0x286   :  { %v235_v19 = vmul.f32 %v222_v18, %v211_v5 }
 0x287   :  { %v253_v20 = vrot.slane %v252_v17, 2 }
 0x288   :  { %v240_v22 = vsel %vm238_vm7, %v235_v19, 0.0 }
 0x289   :  { %v254_v23 = vadd.f32 %v253_v20, %v252_v17  ;;  %v241_v24 = vadd.f32 %v240_v22, %v239_v21 }
 0x28b   :  { %v255_v25 = vrot.slane %v254_v23, 1  ;;  %v242_v26 = vrot.slane %v241_v24, 4 }
 0x28d   :  { %v256_v28 = vadd.f32 %v255_v25, %v254_v23  ;;  %v243_v29 = vadd.f32 %v242_v26, %v241_v24 }
 0x28f   :  { %v244_v30 = vrot.slane %v243_v29, 2  ;;  %v265_v31 = vadd.f32 %v305_v27, %v256_v28 }
 0x291   :  { %v245_v32 = vadd.f32 %v244_v30, %v243_v29  ;;  %v267_v34 = vmax.f32 %v265_v31, 0.0 }
 0x293   :  { %v246_v33 = vrot.slane %v245_v32, 1  ;;  %v276_v38 = vmul.f32 %v306_v35, %v267_v34 }
 0x295   :  { %v247_v36 = vadd.f32 %v246_v33, %v245_v32  ;;  %v279_v41 = vrot.slane %v276_v38, 7 }
 0x297   :  { %v264_v37 = vadd.f32 %v305_v27, %v247_v36 }
 0x299   :  { %v266_v39 = vmax.f32 %v264_v37, 0.0 }
 0x29b   :  { %v275_v40 = vmul.f32 %v306_v35, %v266_v39 }
 0x29d   :  { %v280_v42 = vsel %vm147_vm3, %v279_v41, %v275_v40 }
 0x29e   :  { %v283_v43 = vsel %vm282_vm8, %v280_v42, 0.0 }
 0x29f   :  { %284 = vadd.xlane.f32.xlu0 %v283_v43 }
 0x328   :  { %v285_v45 = vpop.xlane.xlu0 %284 }
 0x329   :  { %v293_v46 = vadd.f32 %v307_v44, %v285_v45 }
 0x32b   :  { %295 = vst.msk [vmem:[%s520_s9] sm:$0x3] %vm294_vm9, %v293_v46 }
 0x32c   :  { %300 = vsyncpa [#allocation4], 1 }
 0x32d   :  { %301 = vsyncpa [#allocation6], 1 }
 0x32e   :  { %302 = vsyncpa [#allocation9], 1 }

</bundles_post_ra>
